<compile_context>
chip_gen: v7x
topology: tpu7x:2x2x1
jax: 0.10.0
libtpu: 0.0.40
codegen_flags: <defaults>
</compile_context>

<pallas_src>
import functools
import math

import jax
import jax.numpy as jnp
from jax.experimental import pallas as pl
from jax.experimental.pallas import tpu as pltpu

_LANE = 128
_SUBLANE = 8
_TB_TARGET = 256        # batch tile target (multiple of 256 matches v6e/v7x MXU rows)


def _round_up(x, m):
    return ((x + m - 1) // m) * m


# ----------------------------- fused Pallas kernel ---------------------------

def _fused_resnet_kernel(*refs, num_blocks, one_hot):
    """Whole forward pass for one batch tile; everything stays on-chip."""
    if one_hot:
        x_ref, rep_ref, cmp_ref, *rest = refs
    else:
        x_ref, *rest = refs
    if num_blocks > 0:
        (w1_ref, b1_ref, w2_ref, b2_ref,
         wb1_ref, bb1_ref, wb2_ref, bb2_ref,
         wo_ref, bo_ref, o_ref) = rest
    else:
        (w1_ref, b1_ref, w2_ref, b2_ref, wo_ref, bo_ref, o_ref) = rest

    if one_hot:
        # In-kernel one-hot (exact):
        #   rep[b, j] = states[b, j // depth]   via a tiny 0/1 constant matmul
        #   onehot[b, j] = (rep[b, j] == j % depth)   (padded cols compare against -1)
        states_f = x_ref[...].astype(jnp.float32)                    # [TB, S]
        rep = jnp.dot(states_f, rep_ref[...],
                      preferred_element_type=jnp.float32)            # [TB, in_pad]
        x = (rep == cmp_ref[...]).astype(jnp.bfloat16)               # [TB, in_pad]
    else:
        x = x_ref[...].astype(jnp.bfloat16)

    # fc1 + relu
    h = jnp.dot(x, w1_ref[...], preferred_element_type=jnp.float32) + b1_ref[...]
    h = jnp.maximum(h, 0.0)                                          # [TB, h1_pad] f32

    # fc2 + relu
    h = jnp.dot(h.astype(jnp.bfloat16), w2_ref[...],
                preferred_element_type=jnp.float32) + b2_ref[...]
    h = jnp.maximum(h, 0.0)                                          # [TB, res_pad] f32

    # residual blocks: relu( relu(h @ W1 + b1) @ W2 + b2 + h )
    for blk in range(num_blocks):                                    # static unroll
        t = jnp.dot(h.astype(jnp.bfloat16), wb1_ref[blk],
                    preferred_element_type=jnp.float32) + bb1_ref[blk]
        t = jnp.maximum(t, 0.0)
        t = jnp.dot(t.astype(jnp.bfloat16), wb2_ref[blk],
                    preferred_element_type=jnp.float32) + bb2_ref[blk]
        h = jnp.maximum(t + h, 0.0)

    # fc_out (lane-dense padded output, no activation)
    y = jnp.dot(h.astype(jnp.bfloat16), wo_ref[...],
                preferred_element_type=jnp.float32) + bo_ref[...]
    o_ref[...] = y.astype(o_ref.dtype)                               # [TB, out_pad]


# ----------------------------- tiling helper ----------------------------------

def _choose_batch_tiling(batch):
    """Pick a batch tile and a padded batch with >= 2 parallel grid steps."""
    half = -(-batch // 2)
    tb = min(_TB_TARGET, max(_SUBLANE, _round_up(half, _SUBLANE)))
    padded = _round_up(batch, tb)
    if padded // tb < 2:          # keep 2nd TensorCore busy on v7x
        padded = 2 * tb
    return tb, padded


# ----------------------------- parameter packing ------------------------------

def pack_params(params, *, state_dim, one_hot_depth):
    """Pad feature dims to 128 lanes, cast weights to bf16, stack block weights.
    Runs once, outside jit."""
    w1, b1 = params["fc1"]
    w2, b2 = params["fc2"]
    wo, bo = params["fc_out"]
    blocks = params["blocks"]

    in_features = w1.shape[0]
    h1_dim, res_dim, out_dim = w1.shape[1], w2.shape[1], wo.shape[1]

    in_pad = _round_up(in_features, _LANE) if one_hot_depth > 0 else in_features
    h1_pad = _round_up(h1_dim, _LANE)
    res_pad = _round_up(res_dim, _LANE)
    out_pad = _round_up(out_dim, _LANE)

    def pad2(a, rows, cols):
        return jnp.pad(a, ((0, rows - a.shape[0]), (0, cols - a.shape[1])))

    packed = {
        "w1": pad2(w1, in_pad, h1_pad).astype(jnp.bfloat16),
        "b1": pad2(b1, 1, h1_pad).astype(jnp.float32),
        "w2": pad2(w2, h1_pad, res_pad).astype(jnp.bfloat16),
        "b2": pad2(b2, 1, res_pad).astype(jnp.float32),
        "wo": pad2(wo, res_pad, out_pad).astype(jnp.bfloat16),
        "bo": pad2(bo, 1, out_pad).astype(jnp.float32),
    }
    if blocks:
        packed["wb1"] = jnp.stack(
            [pad2(w, res_pad, res_pad) for (w, _, _, _) in blocks]).astype(jnp.bfloat16)
        packed["bb1"] = jnp.stack(
            [pad2(b, 1, res_pad) for (_, b, _, _) in blocks]).astype(jnp.float32)
        packed["wb2"] = jnp.stack(
            [pad2(w, res_pad, res_pad) for (_, _, w, _) in blocks]).astype(jnp.bfloat16)
        packed["bb2"] = jnp.stack(
            [pad2(b, 1, res_pad) for (_, _, _, b) in blocks]).astype(jnp.float32)

    if one_hot_depth > 0:
        s, d = state_dim, one_hot_depth
        cols = jnp.arange(in_pad)
        # 0/1 replication matrix: rep = states @ onehot_rep repeats each state d times.
        packed["onehot_rep"] = (
            jnp.arange(s)[:, None] == (cols[None, :] // d)).astype(jnp.float32)
        # per-column target value (j % d); padded cols get -1 so they compare to 0.
        packed["onehot_cmp"] = jnp.where(
            cols < s * d, cols % d, -1).astype(jnp.float32)[None, :]
    return packed


# ----------------------------- wrapper ---------------------------------------

def resnet_forward(packed, states_nnet, *, state_dim, one_hot_depth,
                   num_resnet_blocks, out_dim):
    one_hot = one_hot_depth > 0
    if one_hot:
        x = states_nnet.astype(jnp.int32)            # [B, state_dim] int32
        feat = state_dim
    else:
        x = states_nnet.astype(jnp.float32)
        feat = x.shape[1]
    batch = x.shape[0]

    in_pad, h1_pad = packed["w1"].shape
    res_pad = packed["w2"].shape[1]
    out_pad = packed["wo"].shape[1]

    tb, padded_batch = _choose_batch_tiling(batch)
    if padded_batch != batch:
        x = jnp.pad(x, ((0, padded_batch - batch), (0, 0)))
    grid = (padded_batch // tb,)

    const2 = lambda i: (0, 0)
    const3 = lambda i: (0, 0, 0)

    inputs = [x]
    in_specs = [pl.BlockSpec((tb, feat), lambda i: (i, 0))]
    if one_hot:
        inputs += [packed["onehot_rep"], packed["onehot_cmp"]]
        in_specs += [pl.BlockSpec((feat, in_pad), const2),
                     pl.BlockSpec((1, in_pad), const2)]
    inputs += [packed["w1"], packed["b1"], packed["w2"], packed["b2"]]
    in_specs += [pl.BlockSpec((in_pad, h1_pad), const2),
                 pl.BlockSpec((1, h1_pad), const2),
                 pl.BlockSpec((h1_pad, res_pad), const2),
                 pl.BlockSpec((1, res_pad), const2)]
    if num_resnet_blocks > 0:
        nb = num_resnet_blocks
        inputs += [packed["wb1"], packed["bb1"], packed["wb2"], packed["bb2"]]
        in_specs += [pl.BlockSpec((nb, res_pad, res_pad), const3),
                     pl.BlockSpec((nb, 1, res_pad), const3),
                     pl.BlockSpec((nb, res_pad, res_pad), const3),
                     pl.BlockSpec((nb, 1, res_pad), const3)]
    inputs += [packed["wo"], packed["bo"]]
    in_specs += [pl.BlockSpec((res_pad, out_pad), const2),
                 pl.BlockSpec((1, out_pad), const2)]

    # VMEM budget: double-buffered weights + x/out tiles + f32 intermediates.
    weight_bytes = sum(int(a.size) * a.dtype.itemsize for a in inputs[1:])
    x_tile_bytes = tb * feat * 4
    out_tile_bytes = tb * out_pad * 4
    interm_bytes = 8 * tb * max(in_pad, h1_pad, res_pad, out_pad) * 4
    needed = 2 * (weight_bytes + x_tile_bytes + out_tile_bytes) + interm_bytes
    vmem_limit = int(min(64 << 20, max(needed + (4 << 20), 32 << 20)))

    flops = 2 * padded_batch * (
        (feat * in_pad if one_hot else 0)
        + in_pad * h1_pad
        + h1_pad * res_pad
        + 2 * num_resnet_blocks * res_pad * res_pad
        + res_pad * out_pad)
    bytes_accessed = weight_bytes + padded_batch * (feat * 4 + out_pad * 4)
    cost = pl.CostEstimate(flops=flops, transcendentals=0,
                           bytes_accessed=bytes_accessed)

    kernel = functools.partial(_fused_resnet_kernel,
                               num_blocks=num_resnet_blocks, one_hot=one_hot)

    y_pad = pl.pallas_call(
        kernel,
        out_shape=jax.ShapeDtypeStruct((padded_batch, out_pad), jnp.float32),
        grid=grid,
        in_specs=in_specs,
        out_specs=pl.BlockSpec((tb, out_pad), lambda i: (i, 0)),
        compiler_params=pltpu.CompilerParams(
            dimension_semantics=("parallel",),
            vmem_limit_bytes=vmem_limit),
        cost_estimate=cost,
    )(*inputs)

    return y_pad[:batch, :out_dim]


# ----------------------------- parameter init --------------------------------

def _init_linear(key, fan_in, fan_out):
    """PyTorch nn.Linear init: U(-1/sqrt(fan_in), 1/sqrt(fan_in)).
    Weight returned transposed to [fan_in, fan_out]; bias as [1, fan_out]."""
    kw, kb = jax.random.split(key)
    bound = 1.0 / math.sqrt(fan_in)
    w = jax.random.uniform(kw, (fan_in, fan_out), jnp.float32, -bound, bound)
    b = jax.random.uniform(kb, (1, fan_out), jnp.float32, -bound, bound)
    return w, b


def make_params(key, state_dim, one_hot_depth, h1_dim, resnet_dim,
                num_resnet_blocks, out_dim):
    in_dim = state_dim * one_hot_depth if one_hot_depth > 0 else state_dim
    keys = jax.random.split(key, 3 + 2 * max(num_resnet_blocks, 1))
    fc1 = _init_linear(keys[0], in_dim, h1_dim)
    fc2 = _init_linear(keys[1], h1_dim, resnet_dim)
    fc_out = _init_linear(keys[2], resnet_dim, out_dim)
    blocks = []
    for bnum in range(num_resnet_blocks):
        w1, b1 = _init_linear(keys[3 + 2 * bnum], resnet_dim, resnet_dim)
        w2, b2 = _init_linear(keys[4 + 2 * bnum], resnet_dim, resnet_dim)
        blocks.append((w1, b1, w2, b2))
    return {"fc1": fc1, "fc2": fc2, "fc_out": fc_out, "blocks": blocks}


# ----------------------------- reference (for self-check) --------------------

def _reference_forward(packed, states, *, state_dim, one_hot_depth,
                       num_resnet_blocks, out_dim):
    """Plain-JAX forward with the same packed bf16 weights (apples-to-apples)."""
    if one_hot_depth > 0:
        x = jax.nn.one_hot(states.astype(jnp.int32), one_hot_depth,
                           dtype=jnp.float32)
        x = x.reshape(states.shape[0], state_dim * one_hot_depth)
        x = jnp.pad(x, ((0, 0), (0, packed["w1"].shape[0] - x.shape[1])))
    else:
        x = states.astype(jnp.float32)

    def lin(h, w, b):
        return jnp.dot(h.astype(jnp.bfloat16), w,
                       preferred_element_type=jnp.float32) + b

    h = jnp.maximum(lin(x, packed["w1"], packed["b1"]), 0.0)
    h = jnp.maximum(lin(h, packed["w2"], packed["b2"]), 0.0)
    for i in range(num_resnet_blocks):
        t = jnp.maximum(lin(h, packed["wb1"][i], packed["bb1"][i]), 0.0)
        t = lin(t, packed["wb2"][i], packed["bb2"][i])
        h = jnp.maximum(t + h, 0.0)
    y = lin(h, packed["wo"], packed["bo"])
    return y[:, :out_dim]


# ----------------------------- main -------------------------------------------

if __name__ == "__main__":
    # Small shapes consistent with the PyTorch module.
    STATE_DIM = 8
    ONE_HOT_DEPTH = 4
    H1_DIM = 32
    RESNET_DIM = 32
    NUM_RESNET_BLOCKS = 2
    OUT_DIM = 4
    BATCH = 8

    root = jax.random.PRNGKey(0)
    k_params, k_data = jax.random.split(root)

    params = make_params(k_params, STATE_DIM, ONE_HOT_DEPTH, H1_DIM,
                         RESNET_DIM, NUM_RESNET_BLOCKS, OUT_DIM)
    packed = pack_params(params, state_dim=STATE_DIM, one_hot_depth=ONE_HOT_DEPTH)

    # Integer state input [B, state_dim] with values in [0, one_hot_depth).
    states = jax.random.randint(k_data, (BATCH, STATE_DIM), 0, ONE_HOT_DEPTH,
                                dtype=jnp.int32)

    fwd = jax.jit(functools.partial(
        resnet_forward,
        state_dim=STATE_DIM,
        one_hot_depth=ONE_HOT_DEPTH,
        num_resnet_blocks=NUM_RESNET_BLOCKS,
        out_dim=OUT_DIM,
    ))

    out = fwd(packed, states)
    out = jax.block_until_ready(out)

    assert out.shape == (BATCH, OUT_DIM), out.shape
    assert out.dtype == jnp.float32
    assert bool(jnp.all(jnp.isfinite(out)))

    ref = _reference_forward(packed, states, state_dim=STATE_DIM,
                             one_hot_depth=ONE_HOT_DEPTH,
                             num_resnet_blocks=NUM_RESNET_BLOCKS,
                             out_dim=OUT_DIM)
    assert bool(jnp.allclose(out, ref, atol=5e-2, rtol=5e-2))

    print("KERNEL_OK")
</pallas_src>

<mosaic_0001>
module attributes {stable_mosaic.version = 11 : i64} {
  func.func @_fused_resnet_kernel(%arg0: i32, %arg1: memref<8x8xi32, #tpu.memory_space<vmem>>, %arg2: memref<8x128xf32, #tpu.memory_space<vmem>>, %arg3: memref<1x128xf32, #tpu.memory_space<vmem>>, %arg4: memref<128x128xbf16, #tpu.memory_space<vmem>>, %arg5: memref<1x128xf32, #tpu.memory_space<vmem>>, %arg6: memref<128x128xbf16, #tpu.memory_space<vmem>>, %arg7: memref<1x128xf32, #tpu.memory_space<vmem>>, %arg8: memref<2x128x128xbf16, #tpu.memory_space<vmem>>, %arg9: memref<2x1x128xf32, #tpu.memory_space<vmem>>, %arg10: memref<2x128x128xbf16, #tpu.memory_space<vmem>>, %arg11: memref<2x1x128xf32, #tpu.memory_space<vmem>>, %arg12: memref<128x128xbf16, #tpu.memory_space<vmem>>, %arg13: memref<1x128xf32, #tpu.memory_space<vmem>>, %arg14: memref<8x128xf32, #tpu.memory_space<vmem>>) attributes {dimension_semantics = [#tpu.dimension_semantics<parallel>], iteration_bounds = array<i64: 2>, scalar_prefetch = 0 : i64, scratch_operands = 0 : i64, tpu.core_type = #tpu.core_type<tc>, window_params = [{transform_indices = @transform_0, window_bounds = array<i64: 8, 8>}, {pipeline_mode = #tpu.pipeline_mode<synchronous>, transform_indices = @transform_1, window_bounds = array<i64: 8, 128>}, {pipeline_mode = #tpu.pipeline_mode<synchronous>, transform_indices = @transform_2, window_bounds = array<i64: 1, 128>}, {pipeline_mode = #tpu.pipeline_mode<synchronous>, transform_indices = @transform_3, window_bounds = array<i64: 128, 128>}, {pipeline_mode = #tpu.pipeline_mode<synchronous>, transform_indices = @transform_4, window_bounds = array<i64: 1, 128>}, {pipeline_mode = #tpu.pipeline_mode<synchronous>, transform_indices = @transform_5, window_bounds = array<i64: 128, 128>}, {pipeline_mode = #tpu.pipeline_mode<synchronous>, transform_indices = @transform_6, window_bounds = array<i64: 1, 128>}, {pipeline_mode = #tpu.pipeline_mode<synchronous>, transform_indices = @transform_7, window_bounds = array<i64: 2, 128, 128>}, {pipeline_mode = #tpu.pipeline_mode<synchronous>, transform_indices = @transform_8, window_bounds = array<i64: 2, 1, 128>}, {pipeline_mode = #tpu.pipeline_mode<synchronous>, transform_indices = @transform_9, window_bounds = array<i64: 2, 128, 128>}, {pipeline_mode = #tpu.pipeline_mode<synchronous>, transform_indices = @transform_10, window_bounds = array<i64: 2, 1, 128>}, {pipeline_mode = #tpu.pipeline_mode<synchronous>, transform_indices = @transform_11, window_bounds = array<i64: 128, 128>}, {pipeline_mode = #tpu.pipeline_mode<synchronous>, transform_indices = @transform_12, window_bounds = array<i64: 1, 128>}, {transform_indices = @transform_13, window_bounds = array<i64: 8, 128>}]} {
    %c0 = arith.constant 0 : index
    %c0_0 = arith.constant 0 : index
    %0 = vector.load %arg1[%c0, %c0_0] : memref<8x8xi32, #tpu.memory_space<vmem>>, vector<8x8xi32>
    %1 = arith.sitofp %0 : vector<8x8xi32> to vector<8x8xf32>
    %c0_1 = arith.constant 0 : index
    %c0_2 = arith.constant 0 : index
    %2 = vector.load %arg2[%c0_1, %c0_2] : memref<8x128xf32, #tpu.memory_space<vmem>>, vector<8x128xf32>
    %cst = arith.constant dense<0.000000e+00> : vector<8x128xf32>
    %3 = tpu.matmul %1, %2, %cst {dimension_numbers = #tpu.dot_dimension_numbers<[1], [0], [0], [1], [0, 0, 1, 1], [], []>} : vector<8x8xf32>, vector<8x128xf32>, vector<8x128xf32> -> vector<8x128xf32>
    %c0_3 = arith.constant 0 : index
    %c0_4 = arith.constant 0 : index
    %4 = vector.load %arg3[%c0_3, %c0_4] : memref<1x128xf32, #tpu.memory_space<vmem>>, vector<1x128xf32>
    %5 = vector.broadcast %4 : vector<1x128xf32> to vector<8x128xf32>
    %6 = arith.cmpf oeq, %3, %5 : vector<8x128xf32>
    %7 = arith.extui %6 : vector<8x128xi1> to vector<8x128xi32>
    %8 = arith.sitofp %7 : vector<8x128xi32> to vector<8x128xf32>
    %9 = arith.truncf %8 : vector<8x128xf32> to vector<8x128xbf16>
    %c0_5 = arith.constant 0 : index
    %c0_6 = arith.constant 0 : index
    %10 = vector.load %arg4[%c0_5, %c0_6] : memref<128x128xbf16, #tpu.memory_space<vmem>>, vector<128x128xbf16>
    %cst_7 = arith.constant dense<0.000000e+00> : vector<8x128xf32>
    %11 = tpu.matmul %9, %10, %cst_7 {dimension_numbers = #tpu.dot_dimension_numbers<[1], [0], [0], [1], [0, 0, 1, 1], [], []>} : vector<8x128xbf16>, vector<128x128xbf16>, vector<8x128xf32> -> vector<8x128xf32>
    %c0_8 = arith.constant 0 : index
    %c0_9 = arith.constant 0 : index
    %12 = vector.load %arg5[%c0_8, %c0_9] : memref<1x128xf32, #tpu.memory_space<vmem>>, vector<1x128xf32>
    %13 = vector.broadcast %12 : vector<1x128xf32> to vector<8x128xf32>
    %14 = arith.addf %11, %13 : vector<8x128xf32>
    %cst_10 = arith.constant 0.000000e+00 : f32
    %15 = vector.broadcast %cst_10 : f32 to vector<8x128xf32>
    %16 = arith.maximumf %14, %15 : vector<8x128xf32>
    %17 = arith.truncf %16 : vector<8x128xf32> to vector<8x128xbf16>
    %c0_11 = arith.constant 0 : index
    %c0_12 = arith.constant 0 : index
    %18 = vector.load %arg6[%c0_11, %c0_12] : memref<128x128xbf16, #tpu.memory_space<vmem>>, vector<128x128xbf16>
    %cst_13 = arith.constant dense<0.000000e+00> : vector<8x128xf32>
    %19 = tpu.matmul %17, %18, %cst_13 {dimension_numbers = #tpu.dot_dimension_numbers<[1], [0], [0], [1], [0, 0, 1, 1], [], []>} : vector<8x128xbf16>, vector<128x128xbf16>, vector<8x128xf32> -> vector<8x128xf32>
    %c0_14 = arith.constant 0 : index
    %c0_15 = arith.constant 0 : index
    %20 = vector.load %arg7[%c0_14, %c0_15] : memref<1x128xf32, #tpu.memory_space<vmem>>, vector<1x128xf32>
    %21 = vector.broadcast %20 : vector<1x128xf32> to vector<8x128xf32>
    %22 = arith.addf %19, %21 : vector<8x128xf32>
    %cst_16 = arith.constant 0.000000e+00 : f32
    %23 = vector.broadcast %cst_16 : f32 to vector<8x128xf32>
    %24 = arith.maximumf %22, %23 : vector<8x128xf32>
    %25 = arith.truncf %24 : vector<8x128xf32> to vector<8x128xbf16>
    %c0_17 = arith.constant 0 : index
    %c0_18 = arith.constant 0 : index
    %c0_19 = arith.constant 0 : index
    %26 = vector.load %arg8[%c0_17, %c0_18, %c0_19] : memref<2x128x128xbf16, #tpu.memory_space<vmem>>, vector<1x128x128xbf16>
    %27 = vector.shape_cast %26 : vector<1x128x128xbf16> to vector<128x128xbf16>
    %cst_20 = arith.constant dense<0.000000e+00> : vector<8x128xf32>
    %28 = tpu.matmul %25, %27, %cst_20 {dimension_numbers = #tpu.dot_dimension_numbers<[1], [0], [0], [1], [0, 0, 1, 1], [], []>} : vector<8x128xbf16>, vector<128x128xbf16>, vector<8x128xf32> -> vector<8x128xf32>
    %c0_21 = arith.constant 0 : index
    %c0_22 = arith.constant 0 : index
    %c0_23 = arith.constant 0 : index
    %29 = vector.load %arg9[%c0_21, %c0_22, %c0_23] : memref<2x1x128xf32, #tpu.memory_space<vmem>>, vector<1x1x128xf32>
    %30 = vector.shape_cast %29 : vector<1x1x128xf32> to vector<1x128xf32>
    %31 = vector.broadcast %30 : vector<1x128xf32> to vector<8x128xf32>
    %32 = arith.addf %28, %31 : vector<8x128xf32>
    %cst_24 = arith.constant 0.000000e+00 : f32
    %33 = vector.broadcast %cst_24 : f32 to vector<8x128xf32>
    %34 = arith.maximumf %32, %33 : vector<8x128xf32>
    %35 = arith.truncf %34 : vector<8x128xf32> to vector<8x128xbf16>
    %c0_25 = arith.constant 0 : index
    %c0_26 = arith.constant 0 : index
    %c0_27 = arith.constant 0 : index
    %36 = vector.load %arg10[%c0_25, %c0_26, %c0_27] : memref<2x128x128xbf16, #tpu.memory_space<vmem>>, vector<1x128x128xbf16>
    %37 = vector.shape_cast %36 : vector<1x128x128xbf16> to vector<128x128xbf16>
    %cst_28 = arith.constant dense<0.000000e+00> : vector<8x128xf32>
    %38 = tpu.matmul %35, %37, %cst_28 {dimension_numbers = #tpu.dot_dimension_numbers<[1], [0], [0], [1], [0, 0, 1, 1], [], []>} : vector<8x128xbf16>, vector<128x128xbf16>, vector<8x128xf32> -> vector<8x128xf32>
    %c0_29 = arith.constant 0 : index
    %c0_30 = arith.constant 0 : index
    %c0_31 = arith.constant 0 : index
    %39 = vector.load %arg11[%c0_29, %c0_30, %c0_31] : memref<2x1x128xf32, #tpu.memory_space<vmem>>, vector<1x1x128xf32>
    %40 = vector.shape_cast %39 : vector<1x1x128xf32> to vector<1x128xf32>
    %41 = vector.broadcast %40 : vector<1x128xf32> to vector<8x128xf32>
    %42 = arith.addf %38, %41 : vector<8x128xf32>
    %43 = arith.addf %42, %24 : vector<8x128xf32>
    %cst_32 = arith.constant 0.000000e+00 : f32
    %44 = vector.broadcast %cst_32 : f32 to vector<8x128xf32>
    %45 = arith.maximumf %43, %44 : vector<8x128xf32>
    %46 = arith.truncf %45 : vector<8x128xf32> to vector<8x128xbf16>
    %c1 = arith.constant 1 : index
    %c0_33 = arith.constant 0 : index
    %c0_34 = arith.constant 0 : index
    %47 = vector.load %arg8[%c1, %c0_33, %c0_34] : memref<2x128x128xbf16, #tpu.memory_space<vmem>>, vector<1x128x128xbf16>
    %48 = vector.shape_cast %47 : vector<1x128x128xbf16> to vector<128x128xbf16>
    %cst_35 = arith.constant dense<0.000000e+00> : vector<8x128xf32>
    %49 = tpu.matmul %46, %48, %cst_35 {dimension_numbers = #tpu.dot_dimension_numbers<[1], [0], [0], [1], [0, 0, 1, 1], [], []>} : vector<8x128xbf16>, vector<128x128xbf16>, vector<8x128xf32> -> vector<8x128xf32>
    %c1_36 = arith.constant 1 : index
    %c0_37 = arith.constant 0 : index
    %c0_38 = arith.constant 0 : index
    %50 = vector.load %arg9[%c1_36, %c0_37, %c0_38] : memref<2x1x128xf32, #tpu.memory_space<vmem>>, vector<1x1x128xf32>
    %51 = vector.shape_cast %50 : vector<1x1x128xf32> to vector<1x128xf32>
    %52 = vector.broadcast %51 : vector<1x128xf32> to vector<8x128xf32>
    %53 = arith.addf %49, %52 : vector<8x128xf32>
    %cst_39 = arith.constant 0.000000e+00 : f32
    %54 = vector.broadcast %cst_39 : f32 to vector<8x128xf32>
    %55 = arith.maximumf %53, %54 : vector<8x128xf32>
    %56 = arith.truncf %55 : vector<8x128xf32> to vector<8x128xbf16>
    %c1_40 = arith.constant 1 : index
    %c0_41 = arith.constant 0 : index
    %c0_42 = arith.constant 0 : index
    %57 = vector.load %arg10[%c1_40, %c0_41, %c0_42] : memref<2x128x128xbf16, #tpu.memory_space<vmem>>, vector<1x128x128xbf16>
    %58 = vector.shape_cast %57 : vector<1x128x128xbf16> to vector<128x128xbf16>
    %cst_43 = arith.constant dense<0.000000e+00> : vector<8x128xf32>
    %59 = tpu.matmul %56, %58, %cst_43 {dimension_numbers = #tpu.dot_dimension_numbers<[1], [0], [0], [1], [0, 0, 1, 1], [], []>} : vector<8x128xbf16>, vector<128x128xbf16>, vector<8x128xf32> -> vector<8x128xf32>
    %c1_44 = arith.constant 1 : index
    %c0_45 = arith.constant 0 : index
    %c0_46 = arith.constant 0 : index
    %60 = vector.load %arg11[%c1_44, %c0_45, %c0_46] : memref<2x1x128xf32, #tpu.memory_space<vmem>>, vector<1x1x128xf32>
    %61 = vector.shape_cast %60 : vector<1x1x128xf32> to vector<1x128xf32>
    %62 = vector.broadcast %61 : vector<1x128xf32> to vector<8x128xf32>
    %63 = arith.addf %59, %62 : vector<8x128xf32>
    %64 = arith.addf %63, %45 : vector<8x128xf32>
    %cst_47 = arith.constant 0.000000e+00 : f32
    %65 = vector.broadcast %cst_47 : f32 to vector<8x128xf32>
    %66 = arith.maximumf %64, %65 : vector<8x128xf32>
    %67 = arith.truncf %66 : vector<8x128xf32> to vector<8x128xbf16>
    %c0_48 = arith.constant 0 : index
    %c0_49 = arith.constant 0 : index
    %68 = vector.load %arg12[%c0_48, %c0_49] : memref<128x128xbf16, #tpu.memory_space<vmem>>, vector<128x128xbf16>
    %cst_50 = arith.constant dense<0.000000e+00> : vector<8x128xf32>
    %69 = tpu.matmul %67, %68, %cst_50 {dimension_numbers = #tpu.dot_dimension_numbers<[1], [0], [0], [1], [0, 0, 1, 1], [], []>} : vector<8x128xbf16>, vector<128x128xbf16>, vector<8x128xf32> -> vector<8x128xf32>
    %c0_51 = arith.constant 0 : index
    %c0_52 = arith.constant 0 : index
    %70 = vector.load %arg13[%c0_51, %c0_52] : memref<1x128xf32, #tpu.memory_space<vmem>>, vector<1x128xf32>
    %71 = vector.broadcast %70 : vector<1x128xf32> to vector<8x128xf32>
    %72 = arith.addf %69, %71 : vector<8x128xf32>
    %c0_53 = arith.constant 0 : index
    %c0_54 = arith.constant 0 : index
    %73 = vector.load %arg14[%c0_53, %c0_54] : memref<8x128xf32, #tpu.memory_space<vmem>>, vector<8x128xf32>
    tpu.vector_store %arg14[%c0_53, %c0_54], %72 {strides = array<i32>} : memref<8x128xf32, #tpu.memory_space<vmem>>, vector<8x128xf32>,
    return
  }
  func.func @transform_0(%arg0: i32) -> (i32, i32) {
    %c0_i32 = arith.constant 0 : i32
    %c0_i32_0 = arith.constant 0 : i32
    return %arg0, %c0_i32 : i32, i32
  }
  func.func @transform_1(%arg0: i32) -> (i32, i32) {
    %c0_i32 = arith.constant 0 : i32
    %c0_i32_0 = arith.constant 0 : i32
    %c0_i32_1 = arith.constant 0 : i32
    return %c0_i32, %c0_i32_0 : i32, i32
  }
  func.func @transform_2(%arg0: i32) -> (i32, i32) {
    %c0_i32 = arith.constant 0 : i32
    %c0_i32_0 = arith.constant 0 : i32
    %c0_i32_1 = arith.constant 0 : i32
    return %c0_i32, %c0_i32_0 : i32, i32
  }
  func.func @transform_3(%arg0: i32) -> (i32, i32) {
    %c0_i32 = arith.constant 0 : i32
    %c0_i32_0 = arith.constant 0 : i32
    %c0_i32_1 = arith.constant 0 : i32
    return %c0_i32, %c0_i32_0 : i32, i32
  }
  func.func @transform_4(%arg0: i32) -> (i32, i32) {
    %c0_i32 = arith.constant 0 : i32
    %c0_i32_0 = arith.constant 0 : i32
    %c0_i32_1 = arith.constant 0 : i32
    return %c0_i32, %c0_i32_0 : i32, i32
  }
  func.func @transform_5(%arg0: i32) -> (i32, i32) {
    %c0_i32 = arith.constant 0 : i32
    %c0_i32_0 = arith.constant 0 : i32
    %c0_i32_1 = arith.constant 0 : i32
    return %c0_i32, %c0_i32_0 : i32, i32
  }
  func.func @transform_6(%arg0: i32) -> (i32, i32) {
    %c0_i32 = arith.constant 0 : i32
    %c0_i32_0 = arith.constant 0 : i32
    %c0_i32_1 = arith.constant 0 : i32
    return %c0_i32, %c0_i32_0 : i32, i32
  }
  func.func @transform_7(%arg0: i32) -> (i32, i32, i32) {
    %c0_i32 = arith.constant 0 : i32
    %c0_i32_0 = arith.constant 0 : i32
    %c0_i32_1 = arith.constant 0 : i32
    %c0_i32_2 = arith.constant 0 : i32
    return %c0_i32, %c0_i32_0, %c0_i32_1 : i32, i32, i32
  }
  func.func @transform_8(%arg0: i32) -> (i32, i32, i32) {
    %c0_i32 = arith.constant 0 : i32
    %c0_i32_0 = arith.constant 0 : i32
    %c0_i32_1 = arith.constant 0 : i32
    %c0_i32_2 = arith.constant 0 : i32
    return %c0_i32, %c0_i32_0, %c0_i32_1 : i32, i32, i32
  }
  func.func @transform_9(%arg0: i32) -> (i32, i32, i32) {
    %c0_i32 = arith.constant 0 : i32
    %c0_i32_0 = arith.constant 0 : i32
    %c0_i32_1 = arith.constant 0 : i32
    %c0_i32_2 = arith.constant 0 : i32
    return %c0_i32, %c0_i32_0, %c0_i32_1 : i32, i32, i32
  }
  func.func @transform_10(%arg0: i32) -> (i32, i32, i32) {
    %c0_i32 = arith.constant 0 : i32
    %c0_i32_0 = arith.constant 0 : i32
    %c0_i32_1 = arith.constant 0 : i32
    %c0_i32_2 = arith.constant 0 : i32
    return %c0_i32, %c0_i32_0, %c0_i32_1 : i32, i32, i32
  }
  func.func @transform_11(%arg0: i32) -> (i32, i32) {
    %c0_i32 = arith.constant 0 : i32
    %c0_i32_0 = arith.constant 0 : i32
    %c0_i32_1 = arith.constant 0 : i32
    return %c0_i32, %c0_i32_0 : i32, i32
  }
  func.func @transform_12(%arg0: i32) -> (i32, i32) {
    %c0_i32 = arith.constant 0 : i32
    %c0_i32_0 = arith.constant 0 : i32
    %c0_i32_1 = arith.constant 0 : i32
    return %c0_i32, %c0_i32_0 : i32, i32
  }
  func.func @transform_13(%arg0: i32) -> (i32, i32) {
    %c0_i32 = arith.constant 0 : i32
    %c0_i32_0 = arith.constant 0 : i32
    return %arg0, %c0_i32 : i32, i32
  }
}

</mosaic_0001>

<bundles_post_ra>
// kernel: resnet_forward.1
= control target key start
LH: loop header
LB: loop body
LE: loop exit
PB: predicated region body
PF: predicated region fallthrough
CT: control target
= control target key end

     0   :  { %s2887_s0 = inlined_call_operand.vmem [shape: s32[16,8], index: 0, kind: input, shape index: {}]   ;;  %s2888_s1 = inlined_call_operand.hbm [shape: f32[8,128], index: 1, kind: input, shape index: {}]   ;;  %s2889_s2 = inlined_call_operand.hbm [shape: f32[1,128], index: 2, kind: input, shape index: {}]   ;;  %s2890_s3 = inlined_call_operand.hbm [shape: bf16[128,128], index: 3, kind: input, shape index: {}]   ;;  %s2891_s4 = inlined_call_operand.hbm [shape: f32[1,128], index: 4, kind: input, shape index: {}]   ;;  %s2892_s5 = inlined_call_operand.hbm [shape: bf16[128,128], index: 5, kind: input, shape index: {}]   ;;  %s2893_s6 = inlined_call_operand.hbm [shape: f32[1,128], index: 6, kind: input, shape index: {}]   ;;  %s2894_s7 = inlined_call_operand.hbm [shape: bf16[2,128,128], index: 7, kind: input, shape index: {}]   ;;  %s2895_s8 = inlined_call_operand.vmem [shape: f32[2,1,128], index: 8, kind: input, shape index: {}]   ;;  %s2896_s9 = inlined_call_operand.hbm [shape: bf16[2,128,128], index: 9, kind: input, shape index: {}]   ;;  %s2897_s10 = inlined_call_operand.hbm [shape: f32[2,1,128], index: 10, kind: input, shape index: {}]   ;;  %s2898_s11 = inlined_call_operand.vmem [shape: bf16[128,128], index: 11, kind: input, shape index: {}]   ;;  %s2899_s12 = inlined_call_operand.hbm [shape: f32[1,128], index: 12, kind: input, shape index: {}]   ;;  %s2900_s13 = inlined_call_operand.vmem [shape: f32[16,128], index: 13, kind: output, shape index: {}]  }
   0x1   :  { %2904 = sst [smem:[#allocation25_spill]] %s2889_s2 }
   0x2   :  { %2905 = sst [smem:[#allocation26_spill]] %s2891_s4 }
   0x3   :  { %2906 = sst [smem:[#allocation27_spill]] %s2893_s6 }
   0x4   :  { %18 = vsyncpa [#allocation3], 0 }
   0x5   :  { %19 = vsyncpa [#allocation5], 0 }
   0x6   :  { %20 = vsyncpa [#allocation8], 0 }
   0x7   :  { %21 = vsyncpa [#allocation11], 0 }
   0x8   :  { %22 = vsyncpa [#allocation14], 0 }
   0x9   :  { %23 = vsyncpa [#allocation17], 0  ;;  %s2487_s25 = smov 0  }
   0xa LB: > { %2907 = sst [smem:[#allocation24_spill]] %s2398_s25  ;;  %s2400_s26 = smov [#allocation4]   ;;  %s2398_s25 = sphi %s2487_s25, %s29_s25  }
   0xb   : > { %s362_s27 = sshll.u32 %s2400_s26, 4  ;;  %s2493_s28 = sadd.s32 4294967295, %s2398_s25   ;;  %s2498_s27 = int_to_ptr.vmem [resolvable:$true] %s362_s27 }
   0xc   : > { %p1610_p0 = scmp.ge.s32.totalorder %s2398_s25, 1  ;;  %p338_p1 = scmp.lt.s32.totalorder %s2398_s25, 3 }
   0xd   : > { %p2902_p2 = scmp.eq.s32.totalorder %s2493_s28, 0  ;;  %s2401_s30 = smov [#allocation7]  }
   0xe   : > { %p2500_p3 = pnand %p1610_p0, %p338_p1  ;;  %s386_s14 = sshll.u32 %s2401_s30, 4  ;;  %s2506_s14 = int_to_ptr.vmem [resolvable:$true] %s386_s14 }
   0xf   : > { %s2402_s15 = smov [#allocation10]   ;;  %s2403_s18 = smov [#allocation13]  }
  0x10   : > { %s2908_s29 = scalar_select %p2500_p3, 1, 0 }
  0x11   : > { %p1956_p4 = pneg %p2500_p3  ;;  %s410_s16 = sshll.u32 %s2402_s15, 4  ;;  %s2514_s16 = int_to_ptr.vmem [resolvable:$true] %s410_s16 }
  0x12   : > { %s2516_s19 = sshll.u32 %s2403_s18, 4  ;;  %s2910_s2 = sld [smem:[#allocation25_spill]]  ;;  %s437_s19 = int_to_ptr.vmem [resolvable:$true] %s2516_s19 }
  0x13   : > { %p2510_p5 = pnand %p2902_p2, %p1956_p4 }
  0x15   : > { %p2526_p7 = pneg %p2510_p5 }
  0x18   : > { %s2088_s22 = scalar_lea.hbm %s2910_s2, 16 }
  0x19   : > { %p2089_p6 = scmp.ne.s32.totalorder %s2910_s2, %s2088_s22  ;;  %p2095_p10 = scmp.lt.u32.totalorder %s2088_s22, %s2910_s2 }
  0x1b   : > { %p2091_p8 = pnand %p2526_p7, %p2089_p6 }
  0x1d   : > { %p2092_p9 = pneg %p2091_p8 }
  0x1f   : > { %p2097_p11 = pnand %p2095_p10, %p2092_p9 }
  0x21   : > { %2100 = shalt.err (!%p2097_p11)
}
  0x22   : > { %s2101_s18 = scalar_lea.vmem %s2498_s27, 16  ;;  %s2108_s20 = scalar_lea.vmem %s2498_s27, 32 }
  0x23   : > { %p2102_p12 = scmp.ne.s32.totalorder %s2498_s27, %s2101_s18  ;;  %p2109_p1 = scmp.lt.s32.totalorder %s2498_s27, %s2498_s27 }
  0x24   : > { %p2110_p4 = scmp.lt.s32.totalorder %s2108_s20, %s2101_s18 }
  0x25   : > { %p2104_p13 = pnand %p2102_p12, %p2526_p7 }
  0x26   : > { %p2111_p6 = por %p2110_p4, %p2109_p1 }
  0x27   : > { %p2105_p0 = pneg %p2104_p13 }
  0x29   : > { %p2112_p8 = pnand %p2111_p6, %p2105_p0 }
  0x2b   : > { %2115 = shalt.err (!%p2112_p8)
}
  0x2c   : > { %1962 = dma.hbm_to_vmem [thread:$0]  (!%p2510_p5), %s2910_s2, 16, %s2498_s27, [#allocation5]  }
  0x2d   : > { %s2912_s4 = sld [smem:[#allocation26_spill]] }
  0x33   : > { %s2116_s30 = scalar_lea.hbm %s2912_s4, 16 }
  0x34   : > { %p2117_p9 = scmp.ne.s32.totalorder %s2912_s4, %s2116_s30  ;;  %p2123_p12 = scmp.lt.u32.totalorder %s2116_s30, %s2912_s4 }
  0x36   : > { %p2119_p10 = pnand %p2117_p9, %p2526_p7 }
  0x38   : > { %p2120_p11 = pneg %p2119_p10 }
  0x3a   : > { %p2125_p13 = pnand %p2123_p12, %p2120_p11 }
  0x3c   : > { %2128 = shalt.err (!%p2125_p13)
}
  0x3d   : > { %s2129_s27 = scalar_lea.vmem %s2506_s14, 16  ;;  %s2136_s25 = scalar_lea.vmem %s2506_s14, 32 }
  0x3e   : > { %p2130_p0 = scmp.ne.s32.totalorder %s2506_s14, %s2129_s27  ;;  %p2137_p6 = scmp.lt.s32.totalorder %s2506_s14, %s2506_s14 }
  0x3f   : > { %p2138_p8 = scmp.lt.s32.totalorder %s2136_s25, %s2129_s27 }
  0x40   : > { %p2132_p1 = pnand %p2130_p0, %p2526_p7 }
  0x41   : > { %p2139_p9 = por %p2138_p8, %p2137_p6 }
  0x42   : > { %p2133_p4 = pneg %p2132_p1 }
  0x44   : > { %p2140_p10 = pnand %p2139_p9, %p2133_p4 }
  0x46   : > { %2143 = shalt.err (!%p2140_p10)
}
  0x47   : > { %1968 = dma.hbm_to_vmem [thread:$0]  (!%p2510_p5), %s2912_s4, 16, %s2506_s14, [#allocation8]  }
  0x48   : > { %s2913_s6 = sld [smem:[#allocation27_spill]] }
  0x4e   : > { %s2144_s30 = scalar_lea.hbm %s2913_s6, 16 }
  0x4f   : > { %p2145_p11 = scmp.ne.s32.totalorder %s2913_s6, %s2144_s30  ;;  %p2151_p0 = scmp.lt.u32.totalorder %s2144_s30, %s2913_s6 }
  0x51   : > { %p2147_p12 = pnand %p2145_p11, %p2526_p7 }
  0x53   : > { %p2148_p13 = pneg %p2147_p12 }
  0x55   : > { %p2153_p1 = pnand %p2151_p0, %p2148_p13 }
  0x57   : > { %2156 = shalt.err (!%p2153_p1)
}
  0x58   : > { %s2157_s14 = scalar_lea.vmem %s2514_s16, 16  ;;  %s2164_s25 = scalar_lea.vmem %s2514_s16, 32 }
  0x59   : > { %p2158_p4 = scmp.ne.s32.totalorder %s2514_s16, %s2157_s14  ;;  %p2165_p9 = scmp.lt.s32.totalorder %s2514_s16, %s2514_s16 }
  0x5a   : > { %p2166_p10 = scmp.lt.s32.totalorder %s2164_s25, %s2157_s14 }
  0x5b   : > { %p2160_p6 = pnand %p2158_p4, %p2526_p7 }
  0x5c   : > { %p2167_p11 = por %p2166_p10, %p2165_p9 }
  0x5d   : > { %p2161_p8 = pneg %p2160_p6 }
  0x5f   : > { %p2168_p12 = pnand %p2167_p11, %p2161_p8 }
  0x61   : > { %2171 = shalt.err (!%p2168_p12)
}
  0x62   : > { %1974 = dma.hbm_to_vmem [thread:$0]  (!%p2510_p5), %s2913_s6, 16, %s2514_s16, [#allocation11]  }
  0x63   : > { %s2172_s30 = scalar_lea.hbm %s2896_s9, 2048 }
  0x64   : > { %p2173_p13 = scmp.ne.s32.totalorder %s2896_s9, %s2172_s30  ;;  %p2179_p4 = scmp.lt.u32.totalorder %s2172_s30, %s2896_s9 }
  0x66   : > { %p2175_p0 = pnand %p2173_p13, %p2526_p7 }
  0x68   : > { %p2176_p1 = pneg %p2175_p0 }
  0x6a   : > { %p2181_p6 = pnand %p2179_p4, %p2176_p1 }
  0x6c   : > { %2184 = shalt.err (!%p2181_p6)
}
  0x6d   : > { %s2185_s14 = scalar_lea.vmem %s437_s19, 2048  ;;  %p2193_p11 = scmp.lt.s32.totalorder %s437_s19, %s437_s19 }
  0x6e   : > { %p2186_p8 = scmp.ne.s32.totalorder %s437_s19, %s2185_s14  ;;  %p2194_p12 = scmp.lt.s32.totalorder %s2185_s14, %s2185_s14 }
  0x70   : > { %p2188_p9 = pnand %p2186_p8, %p2526_p7  ;;  %p2195_p2 = por %p2194_p12, %p2193_p11 }
  0x72   : > { %p2189_p10 = pneg %p2188_p9 }
  0x74   : > { %p2196_p3 = pnand %p2195_p2, %p2189_p10 }
  0x76   : > { %2199 = shalt.err (!%p2196_p3)
}
  0x77   : > { %s2404_s16 = smov 64   ;;  %s2405_s25 = smov 4  }
  0x78   : > { %1980 = dma.hbm_to_vmem [thread:$0]  (!%p2510_p5), %s2896_s9, 2048, %s437_s19, [#allocation14], %s2404_s16, %s2404_s16, %s2405_s25  }
  0x79   : > { %s2406_s23 = smov [#allocation2]   ;;  %s2407_s30 = smov [#allocation6]  }
  0x7a   : > { %s351_s24 = sshll.u32 %s2406_s23, 4  ;;  %s372_s15 = sshll.u32 %s2407_s30, 4  ;;  %s352_s24 = int_to_ptr.vmem [resolvable:$true] %s351_s24  ;;  %s373_s15 = int_to_ptr.vmem [resolvable:$true] %s372_s15 }
  0x7b   : > { %s2200_s27 = scalar_lea.hbm %s2888_s1, 128 }
  0x7c   : > { %p2201_p2 = scmp.ne.s32.totalorder %s2888_s1, %s2200_s27  ;;  %p2207_p0 = scmp.lt.u32.totalorder %s2200_s27, %s2888_s1 }
  0x7e   : > { %p2203_p3 = pnand %p2201_p2, %p2526_p7 }
  0x80   : > { %p2204_p13 = pneg %p2203_p3 }
  0x82   : > { %p2209_p1 = pnand %p2207_p0, %p2204_p13 }
  0x84   : > { %2212 = shalt.err (!%p2209_p1)
}
  0x85   : > { %s2213_s19 = scalar_lea.vmem %s352_s24, 128  ;;  %p2221_p9 = scmp.lt.s32.totalorder %s352_s24, %s352_s24 }
  0x86   : > { %p2214_p4 = scmp.ne.s32.totalorder %s352_s24, %s2213_s19  ;;  %p2222_p10 = scmp.lt.s32.totalorder %s2213_s19, %s2213_s19 }
  0x88   : > { %p2216_p6 = pnand %p2214_p4, %p2526_p7  ;;  %p2223_p11 = por %p2222_p10, %p2221_p9 }
  0x8a   : > { %p2217_p8 = pneg %p2216_p6 }
  0x8c   : > { %p2224_p12 = pnand %p2223_p11, %p2217_p8 }
  0x8e   : > { %2227 = shalt.err (!%p2224_p12)
}
  0x8f   : > { %1959 = dma.hbm_to_vmem [thread:$0]  (!%p2510_p5), %s2888_s1, 128, %s352_s24, [#allocation3]  }
  0x90   : > { %s2228_s22 = scalar_lea.hbm %s2890_s3, 1024 }
  0x91   : > { %p2229_p2 = scmp.ne.s32.totalorder %s2890_s3, %s2228_s22  ;;  %p2235_p0 = scmp.lt.u32.totalorder %s2228_s22, %s2890_s3 }
  0x93   : > { %p2231_p3 = pnand %p2229_p2, %p2526_p7 }
  0x95   : > { %p2232_p13 = pneg %p2231_p3 }
  0x97   : > { %p2237_p1 = pnand %p2235_p0, %p2232_p13 }
  0x99   : > { %2240 = shalt.err (!%p2237_p1)
}
  0x9a   : > { %s2241_s27 = scalar_lea.vmem %s373_s15, 1024  ;;  %p2249_p9 = scmp.lt.s32.totalorder %s373_s15, %s373_s15 }
  0x9b   : > { %p2242_p4 = scmp.ne.s32.totalorder %s373_s15, %s2241_s27  ;;  %p2250_p10 = scmp.lt.s32.totalorder %s2241_s27, %s2241_s27 }
  0x9d   : > { %p2244_p6 = pnand %p2242_p4, %p2526_p7  ;;  %p2251_p11 = por %p2250_p10, %p2249_p9 }
  0x9f   : > { %p2245_p8 = pneg %p2244_p6 }
  0xa1   : > { %p2252_p12 = pnand %p2251_p11, %p2245_p8 }
  0xa3   : > { %2255 = shalt.err (!%p2252_p12)
}
  0xa4   : > { %1965 = dma.hbm_to_vmem [thread:$0]  (!%p2510_p5), %s2890_s3, 1024, %s373_s15, [#allocation5], %s2404_s16, %s2404_s16, %s2405_s25  }
  0xa5   : > { %s2408_s19 = smov [#allocation9]   ;;  %s2409_s21 = smov [#allocation12]  }
  0xa6   : > { %s396_s2 = sshll.u32 %s2408_s19, 4  ;;  %s420_s4 = sshll.u32 %s2409_s21, 4  ;;  %s397_s2 = int_to_ptr.vmem [resolvable:$true] %s396_s2  ;;  %s421_s4 = int_to_ptr.vmem [resolvable:$true] %s420_s4 }
  0xa7   : > { %s2256_s23 = scalar_lea.hbm %s2892_s5, 1024 }
  0xa8   : > { %p2257_p2 = scmp.ne.s32.totalorder %s2892_s5, %s2256_s23  ;;  %p2263_p0 = scmp.lt.u32.totalorder %s2256_s23, %s2892_s5 }
  0xaa   : > { %p2259_p3 = pnand %p2257_p2, %p2526_p7 }
  0xac   : > { %p2260_p13 = pneg %p2259_p3 }
  0xae   : > { %p2265_p1 = pnand %p2263_p0, %p2260_p13 }
  0xb0   : > { %2268 = shalt.err (!%p2265_p1)
}
  0xb1   : > { %s2269_s15 = scalar_lea.vmem %s397_s2, 1024  ;;  %p2277_p9 = scmp.lt.s32.totalorder %s397_s2, %s397_s2 }
  0xb2   : > { %p2270_p4 = scmp.ne.s32.totalorder %s397_s2, %s2269_s15  ;;  %p2278_p10 = scmp.lt.s32.totalorder %s2269_s15, %s2269_s15 }
  0xb4   : > { %p2272_p6 = pnand %p2270_p4, %p2526_p7  ;;  %p2279_p11 = por %p2278_p10, %p2277_p9 }
  0xb6   : > { %p2273_p8 = pneg %p2272_p6 }
  0xb8   : > { %p2280_p12 = pnand %p2279_p11, %p2273_p8 }
  0xba   : > { %2283 = shalt.err (!%p2280_p12)
}
  0xbb   : > { %1971 = dma.hbm_to_vmem [thread:$0]  (!%p2510_p5), %s2892_s5, 1024, %s397_s2, [#allocation8], %s2404_s16, %s2404_s16, %s2405_s25  }
  0xbc   : > { %s2284_s6 = scalar_lea.hbm %s2894_s7, 2048 }
  0xbd   : > { %p2285_p2 = scmp.ne.s32.totalorder %s2894_s7, %s2284_s6  ;;  %p2291_p0 = scmp.lt.u32.totalorder %s2284_s6, %s2894_s7 }
  0xbf   : > { %p2287_p3 = pnand %p2285_p2, %p2526_p7 }
  0xc1   : > { %p2288_p13 = pneg %p2287_p3 }
  0xc3   : > { %p2293_p1 = pnand %p2291_p0, %p2288_p13 }
  0xc5   : > { %2296 = shalt.err (!%p2293_p1)
}
  0xc6   : > { %s2297_s20 = scalar_lea.vmem %s421_s4, 2048  ;;  %p2305_p9 = scmp.lt.s32.totalorder %s421_s4, %s421_s4 }
  0xc7   : > { %p2298_p4 = scmp.ne.s32.totalorder %s421_s4, %s2297_s20  ;;  %p2306_p10 = scmp.lt.s32.totalorder %s2297_s20, %s2297_s20 }
  0xc9   : > { %p2300_p6 = pnand %p2298_p4, %p2526_p7  ;;  %p2307_p11 = por %p2306_p10, %p2305_p9 }
  0xcb   : > { %p2301_p8 = pneg %p2300_p6 }
  0xcd   : > { %p2308_p12 = pnand %p2307_p11, %p2301_p8 }
  0xcf   : > { %2311 = shalt.err (!%p2308_p12)
}
  0xd0   : > { %1977 = dma.hbm_to_vmem [thread:$0]  (!%p2510_p5), %s2894_s7, 2048, %s421_s4, [#allocation11], %s2404_s16, %s2404_s16, %s2405_s25  }
  0xd1   : > { %s2410_s15 = smov [#allocation15]   ;;  %s2312_s21 = scalar_lea.hbm %s2897_s10, 32 }
  0xd2   : > { %s449_s24 = sshll.u32 %s2410_s15, 4  ;;  %p2313_p2 = scmp.ne.s32.totalorder %s2897_s10, %s2312_s21  ;;  %s450_s24 = int_to_ptr.vmem [resolvable:$true] %s449_s24 }
  0xd3   : > { %p2319_p0 = scmp.lt.u32.totalorder %s2312_s21, %s2897_s10 }
  0xd4   : > { %p2315_p3 = pnand %p2313_p2, %p2526_p7 }
  0xd6   : > { %p2316_p13 = pneg %p2315_p3 }
  0xd8   : > { %p2321_p1 = pnand %p2319_p0, %p2316_p13 }
  0xda   : > { %2324 = shalt.err (!%p2321_p1)
}
  0xdb   : > { %s2325_s16 = scalar_lea.vmem %s450_s24, 32  ;;  %p2333_p9 = scmp.lt.s32.totalorder %s450_s24, %s450_s24 }
  0xdc   : > { %p2326_p4 = scmp.ne.s32.totalorder %s450_s24, %s2325_s16  ;;  %p2334_p10 = scmp.lt.s32.totalorder %s2325_s16, %s2325_s16 }
  0xde   : > { %p2328_p6 = pnand %p2326_p4, %p2526_p7  ;;  %p2335_p11 = por %p2334_p10, %p2333_p9 }
  0xe0   : > { %p2329_p8 = pneg %p2328_p6 }
  0xe2   : > { %p2336_p12 = pnand %p2335_p11, %p2329_p8 }
  0xe4   : > { %2339 = shalt.err (!%p2336_p12)
}
  0xe5   : > { %s2411_s25 = smov 16   ;;  %s2412_s4 = smov 1  }
  0xe6   : > { %1983 = dma.hbm_to_vmem [thread:$0]  (!%p2510_p5), %s2897_s10, 32, %s450_s24, [#allocation14], %s2411_s25, %s2411_s25, %s2412_s4  }
  0xe7   : > { %s2413_s2 = smov [#allocation16]   ;;  %s2340_s19 = scalar_lea.hbm %s2899_s12, 16 }
  0xe8   : > { %s466_s27 = sshll.u32 %s2413_s2, 4  ;;  %p2341_p2 = scmp.ne.s32.totalorder %s2899_s12, %s2340_s19  ;;  %s467_s27 = int_to_ptr.vmem [resolvable:$true] %s466_s27 }
  0xe9   : > { %p2347_p0 = scmp.lt.u32.totalorder %s2340_s19, %s2899_s12 }
  0xea   : > { %p2343_p3 = pnand %p2341_p2, %p2526_p7 }
  0xec   : > { %p2344_p13 = pneg %p2343_p3 }
  0xee   : > { %p2349_p1 = pnand %p2347_p0, %p2344_p13 }
  0xf0   : > { %2352 = shalt.err (!%p2349_p1)
}
  0xf1   : > { %s2353_s24 = scalar_lea.vmem %s467_s27, 16  ;;  %s2360_s30 = scalar_lea.vmem %s467_s27, 32 }
  0xf2   : > { %p2354_p4 = scmp.ne.s32.totalorder %s467_s27, %s2353_s24  ;;  %p2361_p9 = scmp.lt.s32.totalorder %s467_s27, %s467_s27 }
  0xf3   : > { %p2362_p10 = scmp.lt.s32.totalorder %s2360_s30, %s2353_s24 }
  0xf4   : > { %p2356_p6 = pnand %p2354_p4, %p2526_p7 }
  0xf5   : > { %p2363_p11 = por %p2362_p10, %p2361_p9 }
  0xf6   : > { %p2357_p8 = pneg %p2356_p6 }
  0xf8   : > { %p2364_p12 = pnand %p2363_p11, %p2357_p8 }
  0xfa   : > { %2367 = shalt.err (!%p2364_p12)
}
  0xfb   : > { %1986 = dma.hbm_to_vmem [thread:$0]  (!%p2510_p5), %s2899_s12, 16, %s467_s27, [#allocation17]  }
  0xfc   : > { %p2914_p2 = scmp.ne.s32.totalorder %s2908_s29, 0 }
  0xfd   : > { %p2915_p3 = scmp.eq.s32.totalorder (!%p2914_p2), %s2493_s28, 0 }
  0xfe   : > { %486 = sbr.rel (%p2914_p2) target bundleno = 2027 (0x7eb), region = 72 }
 0x105   : > { %2373 = dma.done.wait (%p2915_p3), [#allocation3], 128   ;;  %p2916_p7 = pmov %p2915_p3 }
 0x106   : > { %p2917_p13 = pmov %p2915_p3 }
 0x107   : > { %2375 = vsyncadd (%p2916_p7), [#allocation3], 4294967168 }
 0x108   : > { %2377 = dma.done.wait (%p2917_p13), [#allocation5], 1040   ;;  %p2918_p0 = pmov %p2915_p3 }
 0x10a   : > { %2379 = vsyncadd (%p2918_p0), [#allocation5], 4294966256  ;;  %p2919_p1 = pmov %p2918_p0 }
 0x10b   : > { %p2920_p5 = pmov %p2918_p0 }
 0x10c   : > { %2381 = dma.done.wait (%p2919_p1), [#allocation8], 1040  }
 0x10d   : > { %2383 = vsyncadd (%p2920_p5), [#allocation8], 4294966256  ;;  %p2921_p4 = pmov %p2918_p0 }
 0x10e   : > { %p2922_p6 = pmov %p2918_p0 }
 0x10f   : > { %2385 = dma.done.wait (%p2921_p4), [#allocation11], 2064  }
 0x110   : > { %2387 = vsyncadd (%p2922_p6), [#allocation11], 4294965232  ;;  %p2923_p8 = pmov %p2918_p0 }
 0x111   : > { %p2924_p9 = pmov %p2918_p0 }
 0x112   : > { %2389 = dma.done.wait (%p2923_p8), [#allocation14], 2080  }
 0x113   : > { %2391 = vsyncadd (%p2924_p9), [#allocation14], 4294965216  ;;  %p2925_p10 = pmov %p2918_p0 }
 0x114   : > { %p2926_p11 = pmov %p2918_p0 }
 0x115   : > { %2393 = dma.done.wait (%p2925_p10), [#allocation17], 16  }
 0x116   : > { %2395 = vsyncadd (%p2926_p11), [#allocation17], 4294967280  ;;  %p564_p12 = scmp.lt.s32.totalorder %s2493_s28, 1  ;;  %v2414_v0 = vmov 0.0   ;;  %vm2415_vm0 = vmmov 0   ;;  %v575_v1 = vld [vmem:[#allocation2] sm:$0xff] }
 0x117   : > { %1771 = vmatprep.subr.mxu0 %v2414_v0  ;;  %1773 = vmatprep.mubr.msk.f32.mxu0 %vm2415_vm0, %v2414_v0  ;;  %vm576_vm1 = vcmask 64512   ;;  %v2032_v4 = vld [vmem:[#allocation6] sm:$0xff]   ;;  %v2033_v5 = vld [vmem:[#allocation6 + $0x8] sm:$0xff]   ;;  %v2034_v6 = vld [vmem:[#allocation6 + $0x10] sm:$0xff]   ;;  %v2416_v21 = vmov 1.0|1.0  }
 0x118   : > { %s2929_s28 = smov (!%p564_p12, %s2493_s28), 1  ;;  %1776 = vmatprep.subr.bf16.mxu1 %v2414_v0  ;;  %1792 = vmatprep.mubr.msk.bf16.mxu1 %vm2415_vm0, %v2414_v0  ;;  %v2035_v7 = vld [vmem:[#allocation6 + $0x18] sm:$0xff]   ;;  %v2036_v8 = vld [vmem:[#allocation6 + $0x20] sm:$0xff]   ;;  %v2037_v9 = vld [vmem:[#allocation6 + $0x28] sm:$0xff]  }
 0x119   : > { %s1633_s29 = sshll.u32 %s2929_s28, 3  ;;  %1772 = vmatpush3.msra.mxu0 %v575_v1  ;;  %1777 = vmatpush3.bf16.msra.mxu1 %v2032_v4  ;;  %v2038_v10 = vld [vmem:[#allocation6 + $0x30] sm:$0xff]   ;;  %v2039_v11 = vld [vmem:[#allocation6 + $0x38] sm:$0xff]   ;;  %v2040_v12 = vld [vmem:[#allocation9] sm:$0xff]  }
 0x11a   : > { %s567_s4 = scalar_lea.vmem %s2887_s0, %s1633_s29  ;;  %1796 = vmatprep.subr.bf16.mxu0 %v2414_v0  ;;  %1778 = vmatprep.subr.bf16.mxu1 %v2414_v0  ;;  %v2041_v13 = vld [vmem:[#allocation9 + $0x8] sm:$0xff]   ;;  %v2042_v14 = vld [vmem:[#allocation9 + $0x10] sm:$0xff]   ;;  %v2043_v15 = vld [vmem:[#allocation9 + $0x18] sm:$0xff]   ;;  %s571_s15 = scalar_lea.vmem %s2900_s13, %s1633_s29 }
 0x11b   : > { %v573_v2 = vld [vmem:[%s567_s4] sm:$0xff]  ;;  %v2044_v16 = vld [vmem:[#allocation9 + $0x20] sm:$0xff]   ;;  %v2045_v17 = vld [vmem:[#allocation9 + $0x28] sm:$0xff]  }
 0x11c   : > { %v574_v3 = vcvt.s32.f32 %v573_v2  ;;  %v1636_v18 = vld [vmem:[#allocation4] ss:$0 sm:$0xff]  ;;  %v2046_v22 = vld [vmem:[#allocation9 + $0x30] sm:$0xff]   ;;  %v2048_v24 = vld [vmem:[#allocation12] sm:$0xff]  }
 0x11d   : > { %1779 = vmatpush3.bf16.msra.mxu1 %v2033_v5  ;;  %v2047_v23 = vld [vmem:[#allocation9 + $0x38] sm:$0xff]   ;;  %v2049_v25 = vld [vmem:[#allocation12 + $0x8] sm:$0xff]   ;;  %v2052_v28 = vld [vmem:[#allocation12 + $0x20] sm:$0xff]  }
 0x11e   : > { %1774 = vmatmul.mubr.msk.f32.vlgmr.msra.gmra.mrb[0].mxu0 %vm576_vm1, %v574_v3  ;;  %1780 = vmatprep.subr.bf16.mxu1 %v2414_v0  ;;  %v2050_v26 = vld [vmem:[#allocation12 + $0x10] sm:$0xff]   ;;  %v2051_v27 = vld [vmem:[#allocation12 + $0x18] sm:$0xff]   ;;  %v2053_v29 = vld [vmem:[#allocation12 + $0x28] sm:$0xff]  }
 0x11f   : > { %1812 = vmatprep.mubr.msk.bf16.mxu0 %vm2415_vm0, %v2414_v0  ;;  %1797 = vmatpush3.bf16.msra.mxu0 %v2040_v12  ;;  %v1638_v30 = vld [vmem:[#allocation7] ss:$0 sm:$0xff]  ;;  %v2054_v38 = vld [vmem:[#allocation12 + $0x30] sm:$0xff]   ;;  %v2056_v40 = vld [vmem:[#allocation13] sm:$0xff]  }
 0x120   : > { %1798 = vmatprep.subr.bf16.mxu0 %v2414_v0  ;;  %v2055_v39 = vld [vmem:[#allocation12 + $0x38] sm:$0xff]   ;;  %v2057_v41 = vld [vmem:[#allocation13 + $0x8] sm:$0xff]   ;;  %v2058_v42 = vld [vmem:[#allocation13 + $0x10] sm:$0xff]  }
 0x121   : > { %1781 = vmatpush3.bf16.msra.mxu1 %v2034_v6  ;;  %v2059_v43 = vld [vmem:[#allocation13 + $0x18] sm:$0xff]   ;;  %v2060_v44 = vld [vmem:[#allocation13 + $0x20] sm:$0xff]   ;;  %v2061_v45 = vld [vmem:[#allocation13 + $0x28] sm:$0xff]  }
 0x122   : > { %1782 = vmatprep.subr.bf16.mxu1 %v2414_v0  ;;  %v1649_v46 = vld [vmem:[#allocation10] ss:$0 sm:$0xff]  ;;  %v2062_v54 = vld [vmem:[#allocation13 + $0x30] sm:$0xff]   ;;  %v2064_v56 = vld [vmem:[#allocation12 + $0x40] sm:$0xff]  }
 0x123   : > { %1799 = vmatpush3.bf16.msra.mxu0 %v2041_v13  ;;  %v2063_v55 = vld [vmem:[#allocation13 + $0x38] sm:$0xff]   ;;  %v2065_v57 = vld [vmem:[#allocation12 + $0x48] sm:$0xff]   ;;  %v2066_v58 = vld [vmem:[#allocation12 + $0x50] sm:$0xff]  }
 0x124   : > { %1800 = vmatprep.subr.bf16.mxu0 %v2414_v0  ;;  %v2067_v59 = vld [vmem:[#allocation12 + $0x58] sm:$0xff]   ;;  %v2068_v60 = vld [vmem:[#allocation12 + $0x60] sm:$0xff]   ;;  %v2069_v61 = vld [vmem:[#allocation12 + $0x68] sm:$0xff]  }
 0x125   : > { %1783 = vmatpush3.bf16.msra.mxu1 %v2035_v7  ;;  %v1658_v62 = vld [vmem:[%s2895_s8] ss:$0 sm:$0xff]  ;;  %v2075_v12 = vld [vmem:[#allocation13 + $0x58] sm:$0xff]   ;;  %v2076_v13 = vld [vmem:[#allocation13 + $0x60] sm:$0xff]  }
 0x126   : > { %1784 = vmatprep.subr.bf16.mxu1 %v2414_v0  ;;  %v2070_v7 = vld [vmem:[#allocation12 + $0x70] sm:$0xff]  }
 0x127   : > { %1801 = vmatpush3.bf16.msra.mxu0 %v2042_v14  ;;  %v2077_v14 = vld [vmem:[#allocation13 + $0x68] sm:$0xff]  }
 0x128   : > { %1802 = vmatprep.subr.bf16.mxu0 %v2414_v0 }
 0x129   : > { %1785 = vmatpush3.bf16.msra.mxu1 %v2036_v8  ;;  %v2071_v8 = vld [vmem:[#allocation12 + $0x78] sm:$0xff]  }
 0x12a   : > { %1786 = vmatprep.subr.bf16.mxu1 %v2414_v0 }
 0x12b   : > { %1803 = vmatpush3.bf16.msra.mxu0 %v2043_v15  ;;  %v1667_v15 = vld [vmem:[#allocation15] ss:$0 sm:$0xff] }
 0x12c   : > { %1804 = vmatprep.subr.bf16.mxu0 %v2414_v0 }
 0x12d   : > { %1787 = vmatpush3.bf16.msra.mxu1 %v2037_v9  ;;  %v2072_v9 = vld [vmem:[#allocation13 + $0x40] sm:$0xff]  }
 0x12e   : > { %1788 = vmatprep.subr.bf16.mxu1 %v2414_v0 }
 0x12f   : > { %1805 = vmatpush3.bf16.msra.mxu0 %v2044_v16 }
 0x130   : > { %1806 = vmatprep.subr.bf16.mxu0 %v2414_v0 }
 0x131   : > { %1789 = vmatpush3.bf16.msra.mxu1 %v2038_v10  ;;  %v2073_v10 = vld [vmem:[#allocation13 + $0x48] sm:$0xff]  }
 0x132   : > { %1790 = vmatprep.subr.bf16.mxu1 %v2414_v0 }
 0x133   : > { %1807 = vmatpush3.bf16.msra.mxu0 %v2045_v17 }
 0x134   : > { %1808 = vmatprep.subr.bf16.mxu0 %v2414_v0 }
 0x135   : > { %1791 = vmatpush3.bf16.msra.mxu1 %v2039_v11  ;;  %v2074_v11 = vld [vmem:[#allocation13 + $0x50] sm:$0xff]  }
 0x136   : > { %1816 = vmatprep.subr.bf16.mxu1 %v2414_v0 }
 0x137   : > { %1809 = vmatpush3.bf16.msra.mxu0 %v2046_v22 }
 0x138   : > { %1810 = vmatprep.subr.bf16.mxu0 %v2414_v0 }
 0x13b   : > { %1811 = vmatpush3.bf16.msra.mxu0 %v2047_v23 }
 0x13c   : > { %1836 = vmatprep.subr.bf16.mxu0 %v2414_v0 }
 0x1f1   : > { %v646_v19 = vpop.f32.mrb[0].mxu0 }
 0x1f2   : > { %vm657_vm2 = vcmp.eq.f32.partialorder %v646_v19, %v1636_v18  ;;  %v1775_v20 = vpop.f32.mrb[1].mxu0 }
 0x1f3   : > { %vm1647_vm3 = vmpackc.low %vm657_vm2, %vm657_vm2 }
 0x1f4   : > { %1793 = vmatmul.mubr.msk.bf16.vlgmr.msra.gmra.mrb[0].mxu1 %vm1647_vm3, %v2416_v21 }
 0x1f5   : > { %1832 = vmatprep.mubr.msk.bf16.mxu1 %vm2415_vm0, %v2414_v0  ;;  %1817 = vmatpush3.bf16.msra.mxu1 %v2048_v24  ;;  %v2078_v24 = vld [vmem:[#allocation13 + $0x70] sm:$0xff]  }
 0x1f6   : > { %1818 = vmatprep.subr.bf16.mxu1 %v2414_v0 }
 0x1f9   : > { %1819 = vmatpush3.bf16.msra.mxu1 %v2049_v25  ;;  %v2079_v25 = vld [vmem:[#allocation13 + $0x78] sm:$0xff]  }
 0x1fa   : > { %1820 = vmatprep.subr.bf16.mxu1 %v2414_v0 }
 0x1fd   : > { %1821 = vmatpush3.bf16.msra.mxu1 %v2050_v26  ;;  %v2080_v26 = vld [vmem:[%s2898_s11] sm:$0xff]  }
 0x1fe   : > { %1822 = vmatprep.subr.bf16.mxu1 %v2414_v0 }
 0x201   : > { %1823 = vmatpush3.bf16.msra.mxu1 %v2051_v27  ;;  %v2081_v27 = vld [vmem:[%s2898_s11 + $0x8] sm:$0xff]  }
 0x202   : > { %1824 = vmatprep.subr.bf16.mxu1 %v2414_v0 }
 0x205   : > { %1825 = vmatpush3.bf16.msra.mxu1 %v2052_v28  ;;  %v2082_v28 = vld [vmem:[%s2898_s11 + $0x10] sm:$0xff]  }
 0x206   : > { %1826 = vmatprep.subr.bf16.mxu1 %v2414_v0 }
 0x209   : > { %1827 = vmatpush3.bf16.msra.mxu1 %v2053_v29  ;;  %v2083_v29 = vld [vmem:[%s2898_s11 + $0x18] sm:$0xff]  }
 0x20a   : > { %1828 = vmatprep.subr.bf16.mxu1 %v2414_v0 }
 0x20d   : > { %1829 = vmatpush3.bf16.msra.mxu1 %v2054_v38 }
 0x20e   : > { %1830 = vmatprep.subr.bf16.mxu1 %v2414_v0 }
 0x211   : > { %1831 = vmatpush3.bf16.msra.mxu1 %v2055_v39 }
 0x212   : > { %1856 = vmatprep.subr.bf16.mxu1 %v2414_v0 }
 0x2c7   : > { %v766_v31 = vpop.f32.mrb[0].mxu1 }
 0x2c8   : > { %v767_v32 = vadd.f32 %v1638_v30, %v766_v31  ;;  %v1794_v33 = vpop.f32.mrb[1].mxu1  ;;  %v2084_v30 = vld [vmem:[%s2898_s11 + $0x20] sm:$0xff]   ;;  %v2085_v31 = vld [vmem:[%s2898_s11 + $0x28] sm:$0xff]  }
 0x2c9   : > { %v769_v34 = vpop.f32.mrb[2].mxu1 }
 0x2ca   : > { %v772_v35 = vmax.f32 %v767_v32, 0.0  ;;  %v1795_v36 = vpop.f32.mrb[3].mxu1  ;;  %v1677_v32 = vld [vmem:[%s2895_s8 + $0x1] ss:$0 sm:$0xff] }
 0x2cc   : > { %v773_v37 = vpack.c.bf16 %v772_v35, %v772_v35 }
 0x2ce   : > { %1813 = vmatmul.mubr.bf16.vlgmr.msra.gmra.mrb[4].mxu0 %v773_v37 }
 0x2cf   : > { %1852 = vmatprep.mubr.msk.bf16.mxu0 %vm2415_vm0, %v2414_v0  ;;  %1837 = vmatpush3.bf16.msra.mxu0 %v2056_v40  ;;  %v2086_v40 = vld [vmem:[%s2898_s11 + $0x30] sm:$0xff]  }
 0x2d0   : > { %1838 = vmatprep.subr.bf16.mxu0 %v2414_v0 }
 0x2d3   : > { %1839 = vmatpush3.bf16.msra.mxu0 %v2057_v41  ;;  %v2087_v41 = vld [vmem:[%s2898_s11 + $0x38] sm:$0xff]  }
 0x2d4   : > { %1840 = vmatprep.subr.bf16.mxu0 %v2414_v0 }
 0x2d7   : > { %1841 = vmatpush3.bf16.msra.mxu0 %v2058_v42  ;;  %v1686_v42 = vld [vmem:[#allocation15 + $0x1] ss:$0 sm:$0xff] }
 0x2d8   : > { %1842 = vmatprep.subr.bf16.mxu0 %v2414_v0 }
 0x2db   : > { %1843 = vmatpush3.bf16.msra.mxu0 %v2059_v43 }
 0x2dc   : > { %1844 = vmatprep.subr.bf16.mxu0 %v2414_v0 }
 0x2df   : > { %1845 = vmatpush3.bf16.msra.mxu0 %v2060_v44 }
 0x2e0   : > { %1846 = vmatprep.subr.bf16.mxu0 %v2414_v0 }
 0x2e3   : > { %1847 = vmatpush3.bf16.msra.mxu0 %v2061_v45 }
 0x2e4   : > { %1848 = vmatprep.subr.bf16.mxu0 %v2414_v0 }
 0x2e7   : > { %1849 = vmatpush3.bf16.msra.mxu0 %v2062_v54 }
 0x2e8   : > { %1850 = vmatprep.subr.bf16.mxu0 %v2414_v0 }
 0x2eb   : > { %1851 = vmatpush3.bf16.msra.mxu0 %v2063_v55 }
 0x2ec   : > { %1876 = vmatprep.subr.bf16.mxu0 %v2414_v0 }
 0x3a1   : > { %v879_v47 = vpop.f32.mrb[4].mxu0 }
 0x3a2   : > { %v880_v48 = vadd.f32 %v1649_v46, %v879_v47  ;;  %v1814_v49 = vpop.f32.mrb[5].mxu0 }
 0x3a3   : > { %v882_v50 = vpop.f32.mrb[6].mxu0 }
 0x3a4   : > { %v2814_v51 = vmax.f32 %v880_v48, 0.0  ;;  %v1815_v52 = vpop.f32.mrb[7].mxu0 }
 0x3a6   : > { %v886_v53 = vpack.c.bf16 %v2814_v51, %v2814_v51 }
 0x3a8   : > { %1833 = vmatmul.mubr.bf16.vlgmr.msra.gmra.mrb[4].mxu1 %v886_v53 }
 0x3a9   : > { %1872 = vmatprep.mubr.msk.bf16.mxu1 %vm2415_vm0, %v2414_v0  ;;  %1857 = vmatpush3.bf16.msra.mxu1 %v2064_v56 }
 0x3aa   : > { %1858 = vmatprep.subr.bf16.mxu1 %v2414_v0 }
 0x3ad   : > { %1859 = vmatpush3.bf16.msra.mxu1 %v2065_v57 }
 0x3ae   : > { %1860 = vmatprep.subr.bf16.mxu1 %v2414_v0 }
 0x3b1   : > { %1861 = vmatpush3.bf16.msra.mxu1 %v2066_v58 }
 0x3b2   : > { %1862 = vmatprep.subr.bf16.mxu1 %v2414_v0 }
 0x3b5   : > { %1863 = vmatpush3.bf16.msra.mxu1 %v2067_v59 }
 0x3b6   : > { %1864 = vmatprep.subr.bf16.mxu1 %v2414_v0 }
 0x3b9   : > { %1865 = vmatpush3.bf16.msra.mxu1 %v2068_v60 }
 0x3ba   : > { %1866 = vmatprep.subr.bf16.mxu1 %v2414_v0 }
 0x3bd   : > { %1867 = vmatpush3.bf16.msra.mxu1 %v2069_v61 }
 0x3be   : > { %1868 = vmatprep.subr.bf16.mxu1 %v2414_v0 }
 0x3c1   : > { %1869 = vmatpush3.bf16.msra.mxu1 %v2070_v7 }
 0x3c2   : > { %1870 = vmatprep.subr.bf16.mxu1 %v2414_v0 }
 0x3c5   : > { %1871 = vmatpush3.bf16.msra.mxu1 %v2071_v8 }
 0x3c6   : > { %1896 = vmatprep.subr.bf16.mxu1 %v2414_v0 }
 0x47b   : > { %v992_v63 = vpop.f32.mrb[4].mxu1 }
 0x47c   : > { %v993_v1 = vadd.f32 %v1658_v62, %v992_v63  ;;  %v1834_v2 = vpop.f32.mrb[5].mxu1 }
 0x47d   : > { %v995_v3 = vpop.f32.mrb[6].mxu1 }
 0x47e   : > { %v998_v4 = vmax.f32 %v993_v1, 0.0  ;;  %v1835_v5 = vpop.f32.mrb[7].mxu1 }
 0x480   : > { %v999_v6 = vpack.c.bf16 %v998_v4, %v998_v4 }
 0x482   : > { %1853 = vmatmul.mubr.bf16.vlgmr.msra.gmra.mrb[8].mxu0 %v999_v6 }
 0x483   : > { %1892 = vmatprep.mubr.msk.bf16.mxu0 %vm2415_vm0, %v2414_v0  ;;  %1877 = vmatpush3.bf16.msra.mxu0 %v2072_v9 }
 0x484   : > { %1878 = vmatprep.subr.bf16.mxu0 %v2414_v0 }
 0x487   : > { %1879 = vmatpush3.bf16.msra.mxu0 %v2073_v10 }
 0x488   : > { %1880 = vmatprep.subr.bf16.mxu0 %v2414_v0 }
 0x48b   : > { %1881 = vmatpush3.bf16.msra.mxu0 %v2074_v11 }
 0x48c   : > { %1882 = vmatprep.subr.bf16.mxu0 %v2414_v0 }
 0x48f   : > { %1883 = vmatpush3.bf16.msra.mxu0 %v2075_v12 }
 0x490   : > { %1884 = vmatprep.subr.bf16.mxu0 %v2414_v0 }
 0x493   : > { %1885 = vmatpush3.bf16.msra.mxu0 %v2076_v13 }
 0x494   : > { %1886 = vmatprep.subr.bf16.mxu0 %v2414_v0 }
 0x497   : > { %1887 = vmatpush3.bf16.msra.mxu0 %v2077_v14 }
 0x498   : > { %1888 = vmatprep.subr.bf16.mxu0 %v2414_v0 }
 0x49b   : > { %1889 = vmatpush3.bf16.msra.mxu0 %v2078_v24 }
 0x49c   : > { %1890 = vmatprep.subr.bf16.mxu0 %v2414_v0 }
 0x49f   : > { %1891 = vmatpush3.bf16.msra.mxu0 %v2079_v25 }
 0x555   : > { %v1105_v16 = vpop.f32.mrb[8].mxu0 }
 0x556   : > { %v1106_v17 = vadd.f32 %v1667_v15, %v1105_v16  ;;  %v1854_v18 = vpop.f32.mrb[9].mxu0 }
 0x557   : > { %v1108_v19 = vpop.f32.mrb[10].mxu0 }
 0x558   : > { %v1111_v20 = vadd.f32 %v1106_v17, %v2814_v51  ;;  %v1855_v21 = vpop.f32.mrb[11].mxu0  ;;  %v1695_v51 = vld [vmem:[#allocation16] ss:$0 sm:$0xff] }
 0x55a   : > { %v1112_v22 = vmax.f32 %v1111_v20, 0.0 }
 0x55c   : > { %v1113_v23 = vpack.c.bf16 %v1112_v22, %v1112_v22 }
 0x55e   : > { %1873 = vmatmul.mubr.bf16.vlgmr.msra.gmra.mrb[8].mxu1 %v1113_v23 }
 0x55f   : > { %1912 = vmatprep.mubr.msk.bf16.mxu1 %vm2415_vm0, %v2414_v0  ;;  %1897 = vmatpush3.bf16.msra.mxu1 %v2080_v26 }
 0x560   : > { %1898 = vmatprep.subr.bf16.mxu1 %v2414_v0 }
 0x563   : > { %1899 = vmatpush3.bf16.msra.mxu1 %v2081_v27 }
 0x564   : > { %1900 = vmatprep.subr.bf16.mxu1 %v2414_v0 }
 0x567   : > { %1901 = vmatpush3.bf16.msra.mxu1 %v2082_v28 }
 0x568   : > { %1902 = vmatprep.subr.bf16.mxu1 %v2414_v0 }
 0x56b   : > { %1903 = vmatpush3.bf16.msra.mxu1 %v2083_v29 }
 0x56c   : > { %1904 = vmatprep.subr.bf16.mxu1 %v2414_v0 }
 0x56f   : > { %1905 = vmatpush3.bf16.msra.mxu1 %v2084_v30 }
 0x570   : > { %1906 = vmatprep.subr.bf16.mxu1 %v2414_v0 }
 0x573   : > { %1907 = vmatpush3.bf16.msra.mxu1 %v2085_v31 }
 0x574   : > { %1908 = vmatprep.subr.bf16.mxu1 %v2414_v0 }
 0x577   : > { %1909 = vmatpush3.bf16.msra.mxu1 %v2086_v40 }
 0x578   : > { %1910 = vmatprep.subr.bf16.mxu1 %v2414_v0 }
 0x57b   : > { %1911 = vmatpush3.bf16.msra.mxu1 %v2087_v41 }
 0x631   : > { %v1221_v33 = vpop.f32.mrb[8].mxu1 }
 0x632   : > { %v1222_v34 = vadd.f32 %v1677_v32, %v1221_v33  ;;  %v1874_v35 = vpop.f32.mrb[9].mxu1 }
 0x633   : > { %v1224_v36 = vpop.f32.mrb[10].mxu1 }
 0x634   : > { %v1227_v37 = vmax.f32 %v1222_v34, 0.0  ;;  %v1875_v38 = vpop.f32.mrb[11].mxu1 }
 0x636   : > { %v1228_v39 = vpack.c.bf16 %v1227_v37, %v1227_v37 }
 0x638   : > { %1893 = vmatmul.mubr.bf16.vlgmr.msra.gmra.mrb[12].mxu0 %v1228_v39 }
 0x70b   : > { %v1336_v43 = vpop.f32.mrb[12].mxu0 }
 0x70c   : > { %v1337_v44 = vadd.f32 %v1686_v42, %v1336_v43  ;;  %v1894_v45 = vpop.f32.mrb[13].mxu0 }
 0x70d   : > { %v1339_v46 = vpop.f32.mrb[14].mxu0 }
 0x70e   : > { %v1342_v47 = vadd.f32 %v1337_v44, %v1112_v22  ;;  %v1895_v48 = vpop.f32.mrb[15].mxu0 }
 0x710   : > { %v1343_v49 = vmax.f32 %v1342_v47, 0.0 }
 0x712   : > { %v1344_v50 = vpack.c.bf16 %v1343_v49, %v1343_v49 }
 0x714   : > { %1913 = vmatmul.mubr.bf16.vlgmr.msra.gmra.mrb[12].mxu1 %v1344_v50 }
 0x7e7   : > { %v1450_v0 = vpop.f32.mrb[12].mxu1 }
 0x7e8   : > { %v1451_v52 = vadd.f32 %v1695_v51, %v1450_v0  ;;  %v1914_v53 = vpop.f32.mrb[13].mxu1 }
 0x7e9   : > { %v1453_v54 = vpop.f32.mrb[14].mxu1 }
 0x7ea   : > { %1456 = vst [vmem:[%s571_s15] sm:$0xff] %v1451_v52  ;;  %v1915_v55 = vpop.f32.mrb[15].mxu1 }
 0x7eb PF: > { %s2927_s14 = sld [smem:[#allocation24_spill]] }
 0x7f1   : > { %s29_s25 = sadd.s32 1, %s2927_s14  }
 0x7f2   : > { %p26_p2 = scmp.ge.s32.totalorder %s29_s25, 4  }
 0x7f4   :  { %28 = sbr.rel (!%p26_p2) target bundleno = 10 (0xa), region = 147 }
 0x7fb   :  { %1476 = vsyncpa [#allocation3], 1 }
 0x7fc   :  { %1478 = vsyncpa [#allocation3 + $0x1], 1 }
 0x7fd   :  { %1479 = vsyncpa [#allocation5], 1 }
 0x7fe   :  { %1480 = vsyncpa [#allocation8], 1 }
 0x7ff   :  { %1481 = vsyncpa [#allocation11], 1 }
 0x800   :  { %1482 = vsyncpa [#allocation14], 1 }
 0x801   :  { %1483 = vsyncpa [#allocation17], 1 }

</bundles_post_ra>
